<compile_context>
chip_gen: v6e
topology: v6e:2x2x1
jax: 0.10.0
libtpu: 0.0.40
codegen_flags: <defaults>
</compile_context>

<pallas_src>
import jax
import jax.numpy as jnp
from jax import lax
from jax.experimental import pallas as pl
from jax.experimental.pallas import tpu as pltpu


def _cosine_ranking_loss_kernel(perm_ref, x_ref, ctx_ref, out_ref, cn_ref, sn_ref):
    """Single-block kernel: row L2-normalize, in-kernel row permute, fused hinge, mean."""
    eps = 1e-8
    x = x_ref[...].astype(jnp.float32)      # (B, D)
    c = ctx_ref[...].astype(jnp.float32)    # (B, D)
    batch = x.shape[0]                      # static

    def _row_normalize(v):
        # clamp(||v||, min=1e-8) then divide  ==  multiply by min(rsqrt(sumsq), 1e8).
        # rsqrt goes to the EUP slot; avoids the VALU-heavy f32 divide.
        sumsq = jnp.sum(v * v, axis=1, keepdims=True)           # (B, 1) lane reduce
        inv = jnp.minimum(lax.rsqrt(sumsq), 1.0 / eps)          # (B, 1)
        return v * inv

    xn = _row_normalize(x)
    cn = _row_normalize(c)

    # In-kernel row permutation of the already-normalized ctx, driven by the
    # scalar-prefetched indices sitting in SMEM. cn is staged in VMEM scratch so
    # rows can be gathered with a dynamic sublane slice. B is small and static,
    # so the gather loop is unrolled at trace time (for large B this would become
    # a fori_loop under a batch-tiled grid).
    cn_ref[...] = cn
    for i in range(batch):
        p = perm_ref[i]                                         # scalar read (SMEM)
        sn_ref[pl.ds(i, 1), :] = cn_ref[pl.ds(p, 1), :]         # dynamic-row gather
    sn = sn_ref[...]

    # Fused similarities: incorrect - correct == sum(xn * (sn - cn), axis=1).
    contrib = jnp.sum(xn * (sn - cn), axis=1, keepdims=True)    # (B, 1)
    # Source hard-codes 0.1 (the `margin` arg is ignored inside cosine_ranking_loss).
    cost = jnp.maximum(0.1 + contrib, 0.0)                      # (B, 1)

    # size_average=True -> mean. (1,1) VMEM output: a single masked vst for a
    # 4-byte result; negligible for this single-block kernel.
    out_ref[...] = jnp.reshape(jnp.sum(cost) * (1.0 / batch), (1, 1))


def cosine_ranking_loss_pallas(input_data, ctx, perm, size_average=True):
    """input_data, ctx: [B, D] float32. perm: [B] int32 permutation of ctx rows."""
    assert input_data.shape == ctx.shape and input_data.ndim == 2
    B, D = input_data.shape
    perm = perm.astype(jnp.int32)

    full_spec = pl.BlockSpec((B, D), lambda i, p_ref: (0, 0))
    grid_spec = pltpu.PrefetchScalarGridSpec(
        num_scalar_prefetch=1,                 # perm lands in SMEM before the grid runs
        grid=(1,),
        in_specs=[full_spec, full_spec],
        out_specs=pl.BlockSpec((1, 1), lambda i, p_ref: (0, 0)),
        scratch_shapes=[
            pltpu.VMEM((B, D), jnp.float32),   # cn staging (gather source)
            pltpu.VMEM((B, D), jnp.float32),   # gathered / shuffled cn
        ],
    )

    out = pl.pallas_call(
        _cosine_ranking_loss_kernel,
        out_shape=jax.ShapeDtypeStruct((1, 1), jnp.float32),
        grid_spec=grid_spec,
        compiler_params=pltpu.CompilerParams(dimension_semantics=("arbitrary",)),
    )(perm, input_data, ctx)

    loss = out[0, 0]
    if not size_average:
        loss = loss * B                        # sum instead of mean
    return loss


def _reference(input_data, ctx, perm):
    eps = 1e-8

    def _normalize(v):
        d = jnp.maximum(jnp.sqrt(jnp.sum(v * v, axis=1)), eps)[:, None]
        return v / d

    xn = _normalize(input_data)
    cn = _normalize(ctx)
    sn = cn[perm]
    correct = jnp.sum(xn * cn, axis=1)
    incorrect = jnp.sum(xn * sn, axis=1)
    cost = jnp.maximum(0.1 + incorrect - correct, 0.0)
    return jnp.mean(cost)


if __name__ == "__main__":
    B, D = 8, 300  # module docstring: 300-dim embeddings; batch kept small
    key = jax.random.PRNGKey(0)
    k1, k2, k3 = jax.random.split(key, 3)
    x = jax.random.normal(k1, (B, D), dtype=jnp.float32)
    ctx = jax.random.normal(k2, (B, D), dtype=jnp.float32)
    # TODO(synk): torch.randperm is host-side RNG; a deterministic JAX permutation
    # stands in for it and is passed to the kernel as scalar-prefetch indices.
    perm = jax.random.permutation(k3, B).astype(jnp.int32)

    loss = cosine_ranking_loss_pallas(x, ctx, perm)
    loss = jax.block_until_ready(loss)

    ref = _reference(x, ctx, perm)
    assert jnp.allclose(loss, ref, atol=1e-5, rtol=1e-5), (loss, ref)

    print("KERNEL_OK")
</pallas_src>

<mosaic_0001>
module attributes {stable_mosaic.version = 11 : i64} {
  func.func @_cosine_ranking_loss_kernel(%arg0: i32, %arg1: memref<8xi32, #tpu.memory_space<smem>>, %arg2: memref<8x300xf32, #tpu.memory_space<vmem>>, %arg3: memref<8x300xf32, #tpu.memory_space<vmem>>, %arg4: memref<1x1xf32, #tpu.memory_space<vmem>>, %arg5: memref<8x300xf32, #tpu.memory_space<vmem>>, %arg6: memref<8x300xf32, #tpu.memory_space<vmem>>) attributes {dimension_semantics = [#tpu.dimension_semantics<arbitrary>], iteration_bounds = array<i64: 1>, scalar_prefetch = 1 : i64, scratch_operands = 2 : i64, tpu.core_type = #tpu.core_type<tc>, window_params = [{pipeline_mode = #tpu.pipeline_mode<synchronous>, transform_indices = @transform_0, window_bounds = array<i64: 8, 300>}, {pipeline_mode = #tpu.pipeline_mode<synchronous>, transform_indices = @transform_1, window_bounds = array<i64: 8, 300>}, {pipeline_mode = #tpu.pipeline_mode<synchronous>, transform_indices = @transform_2, window_bounds = array<i64: 1, 1>}]} {
    %c0 = arith.constant 0 : index
    %c0_0 = arith.constant 0 : index
    %0 = vector.load %arg2[%c0, %c0_0] : memref<8x300xf32, #tpu.memory_space<vmem>>, vector<8x300xf32>
    %c0_1 = arith.constant 0 : index
    %c0_2 = arith.constant 0 : index
    %1 = vector.load %arg3[%c0_1, %c0_2] : memref<8x300xf32, #tpu.memory_space<vmem>>, vector<8x300xf32>
    %2 = arith.mulf %0, %0 : vector<8x300xf32>
    %cst = arith.constant dense<0.000000e+00> : vector<8xf32>
    %3 = vector.multi_reduction <add>, %2, %cst [1] : vector<8x300xf32> to vector<8xf32>
    %4 = vector.shape_cast %3 : vector<8xf32> to vector<8x1xf32>
    %5 = math.rsqrt %4 : vector<8x1xf32>
    %cst_3 = arith.constant 1.000000e+08 : f32
    %6 = vector.broadcast %cst_3 : f32 to vector<8x1xf32>
    %7 = arith.minimumf %5, %6 : vector<8x1xf32>
    %8 = vector.broadcast %7 : vector<8x1xf32> to vector<8x300xf32>
    %9 = arith.mulf %0, %8 : vector<8x300xf32>
    %10 = arith.mulf %1, %1 : vector<8x300xf32>
    %cst_4 = arith.constant dense<0.000000e+00> : vector<8xf32>
    %11 = vector.multi_reduction <add>, %10, %cst_4 [1] : vector<8x300xf32> to vector<8xf32>
    %12 = vector.shape_cast %11 : vector<8xf32> to vector<8x1xf32>
    %13 = math.rsqrt %12 : vector<8x1xf32>
    %cst_5 = arith.constant 1.000000e+08 : f32
    %14 = vector.broadcast %cst_5 : f32 to vector<8x1xf32>
    %15 = arith.minimumf %13, %14 : vector<8x1xf32>
    %16 = vector.broadcast %15 : vector<8x1xf32> to vector<8x300xf32>
    %17 = arith.mulf %1, %16 : vector<8x300xf32>
    %c0_6 = arith.constant 0 : index
    %c0_7 = arith.constant 0 : index
    %18 = vector.load %arg5[%c0_6, %c0_7] : memref<8x300xf32, #tpu.memory_space<vmem>>, vector<8x300xf32>
    tpu.vector_store %arg5[%c0_6, %c0_7], %17 {strides = array<i32>} : memref<8x300xf32, #tpu.memory_space<vmem>>, vector<8x300xf32>,
    %c0_8 = arith.constant 0 : index
    %19 = memref.load %arg1[%c0_8] : memref<8xi32, #tpu.memory_space<smem>>
    %20 = arith.index_cast %19 : i32 to index
    %c0_9 = arith.constant 0 : index
    %21 = vector.load %arg5[%20, %c0_9] : memref<8x300xf32, #tpu.memory_space<vmem>>, vector<1x300xf32>
    %c0_10 = arith.constant 0 : index
    %c0_11 = arith.constant 0 : index
    %22 = vector.load %arg6[%c0_10, %c0_11] : memref<8x300xf32, #tpu.memory_space<vmem>>, vector<1x300xf32>
    tpu.vector_store %arg6[%c0_10, %c0_11], %21 {strides = array<i32>} : memref<8x300xf32, #tpu.memory_space<vmem>>, vector<1x300xf32>,
    %c1 = arith.constant 1 : index
    %23 = memref.load %arg1[%c1] : memref<8xi32, #tpu.memory_space<smem>>
    %24 = arith.index_cast %23 : i32 to index
    %c0_12 = arith.constant 0 : index
    %25 = vector.load %arg5[%24, %c0_12] : memref<8x300xf32, #tpu.memory_space<vmem>>, vector<1x300xf32>
    %c1_13 = arith.constant 1 : index
    %c0_14 = arith.constant 0 : index
    %26 = vector.load %arg6[%c1_13, %c0_14] : memref<8x300xf32, #tpu.memory_space<vmem>>, vector<1x300xf32>
    tpu.vector_store %arg6[%c1_13, %c0_14], %25 {strides = array<i32>} : memref<8x300xf32, #tpu.memory_space<vmem>>, vector<1x300xf32>,
    %c2 = arith.constant 2 : index
    %27 = memref.load %arg1[%c2] : memref<8xi32, #tpu.memory_space<smem>>
    %28 = arith.index_cast %27 : i32 to index
    %c0_15 = arith.constant 0 : index
    %29 = vector.load %arg5[%28, %c0_15] : memref<8x300xf32, #tpu.memory_space<vmem>>, vector<1x300xf32>
    %c2_16 = arith.constant 2 : index
    %c0_17 = arith.constant 0 : index
    %30 = vector.load %arg6[%c2_16, %c0_17] : memref<8x300xf32, #tpu.memory_space<vmem>>, vector<1x300xf32>
    tpu.vector_store %arg6[%c2_16, %c0_17], %29 {strides = array<i32>} : memref<8x300xf32, #tpu.memory_space<vmem>>, vector<1x300xf32>,
    %c3 = arith.constant 3 : index
    %31 = memref.load %arg1[%c3] : memref<8xi32, #tpu.memory_space<smem>>
    %32 = arith.index_cast %31 : i32 to index
    %c0_18 = arith.constant 0 : index
    %33 = vector.load %arg5[%32, %c0_18] : memref<8x300xf32, #tpu.memory_space<vmem>>, vector<1x300xf32>
    %c3_19 = arith.constant 3 : index
    %c0_20 = arith.constant 0 : index
    %34 = vector.load %arg6[%c3_19, %c0_20] : memref<8x300xf32, #tpu.memory_space<vmem>>, vector<1x300xf32>
    tpu.vector_store %arg6[%c3_19, %c0_20], %33 {strides = array<i32>} : memref<8x300xf32, #tpu.memory_space<vmem>>, vector<1x300xf32>,
    %c4 = arith.constant 4 : index
    %35 = memref.load %arg1[%c4] : memref<8xi32, #tpu.memory_space<smem>>
    %36 = arith.index_cast %35 : i32 to index
    %c0_21 = arith.constant 0 : index
    %37 = vector.load %arg5[%36, %c0_21] : memref<8x300xf32, #tpu.memory_space<vmem>>, vector<1x300xf32>
    %c4_22 = arith.constant 4 : index
    %c0_23 = arith.constant 0 : index
    %38 = vector.load %arg6[%c4_22, %c0_23] : memref<8x300xf32, #tpu.memory_space<vmem>>, vector<1x300xf32>
    tpu.vector_store %arg6[%c4_22, %c0_23], %37 {strides = array<i32>} : memref<8x300xf32, #tpu.memory_space<vmem>>, vector<1x300xf32>,
    %c5 = arith.constant 5 : index
    %39 = memref.load %arg1[%c5] : memref<8xi32, #tpu.memory_space<smem>>
    %40 = arith.index_cast %39 : i32 to index
    %c0_24 = arith.constant 0 : index
    %41 = vector.load %arg5[%40, %c0_24] : memref<8x300xf32, #tpu.memory_space<vmem>>, vector<1x300xf32>
    %c5_25 = arith.constant 5 : index
    %c0_26 = arith.constant 0 : index
    %42 = vector.load %arg6[%c5_25, %c0_26] : memref<8x300xf32, #tpu.memory_space<vmem>>, vector<1x300xf32>
    tpu.vector_store %arg6[%c5_25, %c0_26], %41 {strides = array<i32>} : memref<8x300xf32, #tpu.memory_space<vmem>>, vector<1x300xf32>,
    %c6 = arith.constant 6 : index
    %43 = memref.load %arg1[%c6] : memref<8xi32, #tpu.memory_space<smem>>
    %44 = arith.index_cast %43 : i32 to index
    %c0_27 = arith.constant 0 : index
    %45 = vector.load %arg5[%44, %c0_27] : memref<8x300xf32, #tpu.memory_space<vmem>>, vector<1x300xf32>
    %c6_28 = arith.constant 6 : index
    %c0_29 = arith.constant 0 : index
    %46 = vector.load %arg6[%c6_28, %c0_29] : memref<8x300xf32, #tpu.memory_space<vmem>>, vector<1x300xf32>
    tpu.vector_store %arg6[%c6_28, %c0_29], %45 {strides = array<i32>} : memref<8x300xf32, #tpu.memory_space<vmem>>, vector<1x300xf32>,
    %c7 = arith.constant 7 : index
    %47 = memref.load %arg1[%c7] : memref<8xi32, #tpu.memory_space<smem>>
    %48 = arith.index_cast %47 : i32 to index
    %c0_30 = arith.constant 0 : index
    %49 = vector.load %arg5[%48, %c0_30] : memref<8x300xf32, #tpu.memory_space<vmem>>, vector<1x300xf32>
    %c7_31 = arith.constant 7 : index
    %c0_32 = arith.constant 0 : index
    %50 = vector.load %arg6[%c7_31, %c0_32] : memref<8x300xf32, #tpu.memory_space<vmem>>, vector<1x300xf32>
    tpu.vector_store %arg6[%c7_31, %c0_32], %49 {strides = array<i32>} : memref<8x300xf32, #tpu.memory_space<vmem>>, vector<1x300xf32>,
    %c0_33 = arith.constant 0 : index
    %c0_34 = arith.constant 0 : index
    %51 = vector.load %arg6[%c0_33, %c0_34] : memref<8x300xf32, #tpu.memory_space<vmem>>, vector<8x300xf32>
    %52 = arith.subf %51, %17 : vector<8x300xf32>
    %53 = arith.mulf %9, %52 : vector<8x300xf32>
    %cst_35 = arith.constant dense<0.000000e+00> : vector<8xf32>
    %54 = vector.multi_reduction <add>, %53, %cst_35 [1] : vector<8x300xf32> to vector<8xf32>
    %55 = vector.shape_cast %54 : vector<8xf32> to vector<8x1xf32>
    %cst_36 = arith.constant 1.000000e-01 : f32
    %56 = vector.broadcast %cst_36 : f32 to vector<8x1xf32>
    %57 = arith.addf %56, %55 : vector<8x1xf32>
    %cst_37 = arith.constant 0.000000e+00 : f32
    %58 = vector.broadcast %cst_37 : f32 to vector<8x1xf32>
    %59 = arith.maximumf %57, %58 : vector<8x1xf32>
    %60 = vector.shape_cast %59 : vector<8x1xf32> to vector<1x8x1xf32>
    %cst_38 = arith.constant dense<0.000000e+00> : vector<1xf32>
    %61 = vector.multi_reduction <add>, %60, %cst_38 [1, 2] : vector<1x8x1xf32> to vector<1xf32>
    %62 = vector.shape_cast %61 : vector<1xf32> to vector<1x1x1xf32>
    %63 = vector.extract %62[0, 0, 0] : f32 from vector<1x1x1xf32>
    %cst_39 = arith.constant 1.250000e-01 : f32
    %64 = arith.mulf %63, %cst_39 : f32
    %65 = vector.broadcast %64 : f32 to vector<1x1xf32>
    %c0_40 = arith.constant 0 : index
    %c0_41 = arith.constant 0 : index
    %66 = vector.load %arg4[%c0_40, %c0_41] : memref<1x1xf32, #tpu.memory_space<vmem>>, vector<1x1xf32>
    tpu.vector_store %arg4[%c0_40, %c0_41], %65 {strides = array<i32>} : memref<1x1xf32, #tpu.memory_space<vmem>>, vector<1x1xf32>,
    return
  }
  func.func @transform_0(%arg0: i32, %arg1: memref<8xi32, #tpu.memory_space<smem>>) -> (i32, i32) {
    %c0_i32 = arith.constant 0 : i32
    %c0_i32_0 = arith.constant 0 : i32
    %c0_i32_1 = arith.constant 0 : i32
    return %c0_i32, %c0_i32_0 : i32, i32
  }
  func.func @transform_1(%arg0: i32, %arg1: memref<8xi32, #tpu.memory_space<smem>>) -> (i32, i32) {
    %c0_i32 = arith.constant 0 : i32
    %c0_i32_0 = arith.constant 0 : i32
    %c0_i32_1 = arith.constant 0 : i32
    return %c0_i32, %c0_i32_0 : i32, i32
  }
  func.func @transform_2(%arg0: i32, %arg1: memref<8xi32, #tpu.memory_space<smem>>) -> (i32, i32) {
    %c0_i32 = arith.constant 0 : i32
    %c0_i32_0 = arith.constant 0 : i32
    %c0_i32_1 = arith.constant 0 : i32
    return %c0_i32, %c0_i32_0 : i32, i32
  }
}

</mosaic_0001>

<bundles_post_ra>
// kernel: tpu_custom_call.1
= control target key start
LH: loop header
LB: loop body
LE: loop exit
PB: predicated region body
PF: predicated region fallthrough
CT: control target
= control target key end

     0   :  { %s356_s12 = smov [#allocation5]   ;;  %s461_s0 = inlined_call_operand.hbm [shape: s32[8], index: 0, kind: input, shape index: {}]   ;;  %s462_s1 = inlined_call_operand.hbm [shape: f32[8,300], index: 1, kind: input, shape index: {}]   ;;  %s463_s2 = inlined_call_operand.hbm [shape: f32[8,300], index: 2, kind: input, shape index: {}]   ;;  %s464_s3 = inlined_call_operand.hbm [shape: f32[1,1], index: 3, kind: output, shape index: {}]  }
   0x1   :  { %9 = dma.hbm_to_smem %s461_s0, 16, %s356_s12, [#allocation4] }
   0x2   :  { %348 = dma.done.wait [#allocation4], 16 }
   0x3   :  { %349 = vsyncadd [#allocation4], 4294967280 }
   0x4   :  { %11 = sfence }
   0x5   :  { %12 = vsyncpa [#allocation7], 0 }
   0x6   :  { %13 = vsyncpa [#allocation10], 0 }
   0x7   :  { %14 = vsyncpa [#allocation8], 0  ;;  %s357_s15 = smov [#allocation6]   ;;  %s358_s17 = smov [#allocation9]  }
   0x8   :  { %s21_s16 = sshll.u32 %s357_s15, 4  ;;  %s31_s18 = sshll.u32 %s358_s17, 4  ;;  %s22_s16 = int_to_ptr.vmem [resolvable:$true] %s21_s16  ;;  %s32_s18 = int_to_ptr.vmem [resolvable:$true] %s31_s18 }
   0x9   :  { %s296_s19 = scalar_lea.vmem %s22_s16, 384  ;;  %p301_p1 = scmp.lt.s32.totalorder %s22_s16, %s22_s16 }
   0xa   :  { %p297_p0 = scmp.ne.s32.totalorder %s22_s16, %s296_s19  ;;  %p302_p2 = scmp.lt.s32.totalorder %s296_s19, %s296_s19 }
   0xc   :  { %p303_p3 = por %p302_p2, %p301_p1 }
   0xe   :  { %p304_p4 = pnand %p303_p3, %p297_p0 }
  0x10   :  { %307 = shalt.err (!%p304_p4)
}
  0x11   :  { %24 = dma.hbm_to_vmem [thread:$0]  %s462_s1, 384, %s22_s16, [#allocation7]  }
  0x12   :  { %s316_s21 = scalar_lea.vmem %s32_s18, 384  ;;  %p321_p6 = scmp.lt.s32.totalorder %s32_s18, %s32_s18 }
  0x13   :  { %p317_p5 = scmp.ne.s32.totalorder %s32_s18, %s316_s21  ;;  %p322_p7 = scmp.lt.s32.totalorder %s316_s21, %s316_s21 }
  0x15   :  { %p323_p8 = por %p322_p7, %p321_p6 }
  0x17   :  { %p324_p9 = pnand %p323_p8, %p317_p5 }
  0x19   :  { %327 = shalt.err (!%p324_p9)
}
  0x1a   :  { %34 = dma.hbm_to_vmem [thread:$0]  %s463_s2, 384, %s32_s18, [#allocation10]  }
  0x1b   :  { %350 = dma.done.wait [#allocation7], 384  }
  0x1c   :  { %351 = vsyncadd [#allocation7], 4294966912 }
  0x1d   :  { %352 = dma.done.wait [#allocation10], 384  }
  0x1e   :  { %353 = vsyncadd [#allocation10], 4294966912  ;;  %v44_v0 = vld [vmem:[#allocation9] sm:$0xff]  ;;  %v45_v1 = vld [vmem:[#allocation9 + $0x8] sm:$0xff]  ;;  %vm51_vm0 = vcmask 359424   ;;  %s77_s1 = sld [smem:[#allocation5]]  ;;  %v87_v25 = vlaneseq }
  0x1f   :  { %v46_v2 = vld [vmem:[#allocation9 + $0x10] sm:$0xff]  ;;  %v61_v3 = vmul.f32 %v44_v0, %v44_v0  ;;  %v62_v4 = vmul.f32 %v45_v1, %v45_v1  ;;  %v389_v6 = vld [vmem:[#allocation6] sm:$0xff]  ;;  %v393_v8 = vld [vmem:[#allocation6 + $0x10] sm:$0xff]  ;;  %s256_s2 = sld [smem:[#allocation5 + $0x1]]  ;;  %vm200_vm2 = vcmask 7168   ;;  %vm213_vm3 = vcmask 0  }
  0x20   :  { %v63_v5 = vmul.f32 %v46_v2, %v46_v2  ;;  %v391_v7 = vld [vmem:[#allocation6 + $0x8] sm:$0xff]  ;;  %v47_v9 = vmul.f32 %v389_v6, %v389_v6  ;;  %v49_v11 = vmul.f32 %v393_v8, %v393_v8  ;;  %s403_s26 = sld [smem:[#allocation5 + $0x2]]  ;;  %vm432_vm1 = vcmp.lt.s32.totalorder %v87_v25, 300 }
  0x21   :  { %v48_v10 = vmul.f32 %v391_v7, %v391_v7  ;;  %v64_v12 = vadd.f32 %v62_v4, %v61_v3  ;;  %s405_s27 = sld [smem:[#allocation5 + $0x3]] }
  0x22   :  { %v65_v13 = vsel %vm51_vm0, %v63_v5, 0.0  ;;  %v52_v15 = vsel %vm51_vm0, %v49_v11, 0.0  ;;  %s407_s29 = sld [smem:[#allocation5 + $0x4]] }
  0x23   :  { %v50_v14 = vadd.f32 %v48_v10, %v47_v9  ;;  %v66_v16 = vadd.f32 %v65_v13, %v64_v12  ;;  %s409_s6 = sld [smem:[#allocation5 + $0x5]] }
  0x24   :  { %s78_s24 = sshra.s32 %s77_s1, 3  ;;  %s81_s30 = sand.u32 7, %s77_s1 }
  0x25   :  { %67 = vadd.xlane.f32.xlu0 %v66_v16  ;;  %v53_v17 = vadd.f32 %v52_v15, %v50_v14  ;;  %s94_s25 = sshra.s32 %s256_s2, 3  ;;  %s255_s28 = smul.u32 24, %s78_s24 }
  0x26   :  { %s257_s4 = smul.u32 24, %s94_s25  ;;  %s97_s5 = sand.u32 7, %s256_s2 }
  0x27   :  { %s411_s7 = sld [smem:[#allocation5 + $0x6]]  ;;  %s413_s8 = sadd.s32 %s255_s28, %s81_s30 }
  0x28   :  { %s415_s9 = sld [smem:[#allocation5 + $0x7]]  ;;  %s417_s10 = sadd.s32 %s257_s4, %s97_s5 }
  0x29   :  { %54 = vadd.xlane.f32.xlu0 %v53_v17  ;;  %s107_s11 = sshra.s32 %s403_s26, 3  ;;  %s120_s12 = sshra.s32 %s405_s27, 3 }
  0x2a   :  { %s110_s13 = sand.u32 7, %s403_s26  ;;  %s133_s14 = sshra.s32 %s407_s29, 3 }
  0x2b   :  { %s259_s15 = smul.u32 24, %s107_s11  ;;  %s146_s16 = sshra.s32 %s409_s6, 3 }
  0x2c   :  { %s261_s17 = smul.u32 24, %s120_s12  ;;  %s123_s20 = sand.u32 7, %s405_s27 }
  0x2d   :  { %s159_s18 = sshra.s32 %s411_s7, 3  ;;  %s263_s19 = smul.u32 24, %s133_s14 }
  0x2e   :  { %s172_s0 = sshra.s32 %s415_s9, 3  ;;  %s265_s21 = smul.u32 24, %s146_s16 }
  0x2f   :  { %s136_s22 = sand.u32 7, %s407_s29  ;;  %s267_s23 = smul.u32 24, %s159_s18 }
  0x30   :  { %s149_s1 = sand.u32 7, %s409_s6  ;;  %s269_s2 = smul.u32 24, %s172_s0 }
  0x31   :  { %s162_s24 = sand.u32 7, %s411_s7  ;;  %s175_s25 = sand.u32 7, %s415_s9 }
  0x32   :  { %s113_s26 = sadd.s32 %s259_s15, %s110_s13  ;;  %s126_s28 = sadd.s32 %s261_s17, %s123_s20 }
  0x33   :  { %s139_s27 = sadd.s32 %s263_s19, %s136_s22  ;;  %s152_s30 = sadd.s32 %s265_s21, %s149_s1 }
  0x34   :  { %s165_s4 = sadd.s32 %s267_s23, %s162_s24  ;;  %s178_s5 = sadd.s32 %s269_s2, %s175_s25 }
  0x35   :  { %s85_s29 = scalar_lea.vmem [#allocation2], %s413_s8  ;;  %s101_s6 = scalar_lea.vmem [#allocation2], %s417_s10 }
  0x36   :  { %s114_s7 = scalar_lea.vmem [#allocation2], %s113_s26  ;;  %s127_s9 = scalar_lea.vmem [#allocation2], %s126_s28 }
  0x37   :  { %s140_s8 = scalar_lea.vmem [#allocation2], %s139_s27  ;;  %s153_s10 = scalar_lea.vmem [#allocation2], %s152_s30 }
  0x38   :  { %s166_s11 = scalar_lea.vmem [#allocation2], %s165_s4  ;;  %s179_s12 = scalar_lea.vmem [#allocation2], %s178_s5 }
  0x39   :  { %s359_s13 = smov [#allocation11]  }
  0x3a   :  { %s221_s14 = sshll.u32 %s359_s13, 4  ;;  %s222_s14 = int_to_ptr.vmem [resolvable:$true] %s221_s14 }
  0x3b   :  { %s328_s17 = scalar_lea.vmem %s222_s14, 16  ;;  %s332_s18 = scalar_lea.vmem %s222_s14, 32 }
  0x3c   :  { %p329_p10 = scmp.ne.s32.totalorder %s222_s14, %s328_s17  ;;  %p333_p11 = scmp.lt.s32.totalorder %s222_s14, %s222_s14 }
  0x3d   :  { %p334_p12 = scmp.lt.s32.totalorder %s332_s18, %s328_s17 }
  0x3f   :  { %p335_p13 = por %p334_p12, %p333_p11 }
  0x41   :  { %p336_p0 = pnand %p335_p13, %p329_p10 }
  0xae   :  { %v68_v18 = vpop.xlane.xlu0 %67 }
  0xaf   :  { %276 = vrsqrt.f32 %v68_v18 }
  0xb2   :  { %v55_v19 = vpop.xlane.xlu0 %54 }
  0xb3   :  { %278 = vrsqrt.f32 %v55_v19 }
  0xbc   :  { %v277_v20 = vpop.eup %276 }
  0xbd   :  { %v70_v21 = vmin.f32 %v277_v20, 1e+08 }
  0xbf   :  { %v71_v22 = vmul.f32 %v70_v21, %v44_v0  ;;  %v72_v23 = vmul.f32 %v70_v21, %v45_v1  ;;  %v73_v24 = vmul.f32 %v70_v21, %v46_v2 }
  0xc0   :  { %v279_v33 = vpop.eup %278 }
  0xc1   :  { %74 = vst [vmem:[#allocation2] sm:$0xff] %v71_v22  ;;  %75 = vst [vmem:[#allocation2 + $0x8] sm:$0xff] %v72_v23  ;;  %v57_v36 = vmin.f32 %v279_v33, 1e+08 }
  0xc2   :  { %76 = vst.msk [vmem:[#allocation2 + $0x10] sm:$0xff] %vm51_vm0, %v73_v24 }
  0xc3   :  { %v58_v37 = vmul.f32 %v57_v36, %v389_v6  ;;  %v59_v38 = vmul.f32 %v57_v36, %v391_v7  ;;  %v60_v39 = vmul.f32 %v57_v36, %v393_v8 }
  0xc9   :  { %v86_v27 = vld [vmem:[%s85_s29] ss:$8 sm:$0x7] }
  0xca   :  { %v102_v28 = vld [vmem:[%s101_s6] ss:$8 sm:$0x7]  ;;  %91 = vst.msk [vmem:[#allocation3] ss:$8 sm:$0x7] %vm432_vm1, %v86_v27 }
  0xcb   :  { %104 = vst.msk [vmem:[#allocation3 + $0x1] ss:$8 sm:$0x7] %vm432_vm1, %v102_v28  ;;  %v115_v29 = vld [vmem:[%s114_s7] ss:$8 sm:$0x7] }
  0xcc   :  { %v128_v30 = vld [vmem:[%s127_s9] ss:$8 sm:$0x7]  ;;  %117 = vst.msk [vmem:[#allocation3 + $0x2] ss:$8 sm:$0x7] %vm432_vm1, %v115_v29 }
  0xcd   :  { %130 = vst.msk [vmem:[#allocation3 + $0x3] ss:$8 sm:$0x7] %vm432_vm1, %v128_v30  ;;  %v141_v31 = vld [vmem:[%s140_s8] ss:$8 sm:$0x7] }
  0xce   :  { %v154_v32 = vld [vmem:[%s153_s10] ss:$8 sm:$0x7]  ;;  %143 = vst.msk [vmem:[#allocation3 + $0x4] ss:$8 sm:$0x7] %vm432_vm1, %v141_v31 }
  0xcf   :  { %156 = vst.msk [vmem:[#allocation3 + $0x5] ss:$8 sm:$0x7] %vm432_vm1, %v154_v32  ;;  %v167_v34 = vld [vmem:[%s166_s11] ss:$8 sm:$0x7] }
  0xd0   :  { %v180_v35 = vld [vmem:[%s179_s12] ss:$8 sm:$0x7]  ;;  %169 = vst.msk [vmem:[#allocation3 + $0x6] ss:$8 sm:$0x7] %vm432_vm1, %v167_v34 }
  0xd1   :  { %182 = vst.msk [vmem:[#allocation3 + $0x7] ss:$8 sm:$0x7] %vm432_vm1, %v180_v35 }
  0xd8   :  { %v184_v40 = vld [vmem:[#allocation3] sm:$0xff]  ;;  %v185_v41 = vld [vmem:[#allocation3 + $0x8] sm:$0xff]  ;;  %v186_v42 = vld [vmem:[#allocation3 + $0x10] sm:$0xff] }
  0xd9   :  { %v187_v43 = vsub.f32 %v184_v40, %v71_v22  ;;  %v188_v44 = vsub.f32 %v185_v41, %v72_v23  ;;  %v189_v45 = vsub.f32 %v186_v42, %v73_v24 }
  0xdb   :  { %v190_v46 = vmul.f32 %v187_v43, %v58_v37  ;;  %v191_v47 = vmul.f32 %v188_v44, %v59_v38  ;;  %v192_v48 = vmul.f32 %v189_v45, %v60_v39 }
  0xdd   :  { %v193_v49 = vadd.f32 %v191_v47, %v190_v46  ;;  %v194_v50 = vsel %vm51_vm0, %v192_v48, 0.0 }
  0xdf   :  { %v195_v51 = vadd.f32 %v194_v50, %v193_v49 }
  0xe1   :  { %196 = vadd.xlane.f32.xlu1 %v195_v51 }
 0x16a   :  { %v197_v52 = vpop.xlane.xlu1 %196 }
 0x16b   :  { %v198_v53 = vadd.f32 0.1, %v197_v52 }
 0x16d   :  { %v199_v54 = vmax.f32 %v198_v53, 0.0 }
 0x16f   :  { %v201_v55 = vsel %vm200_vm2, %v199_v54, 0.0 }
 0x170   :  { %202 = vadd.xlane.f32.xlu1 %v201_v55 }
 0x1f9   :  { %v203_v56 = vpop.xlane.xlu1 %202 }
 0x1fa   :  { %v204_v57 = vrot.slane %v203_v56, 4 }
 0x1fc   :  { %v205_v58 = vadd.f32 %v204_v57, %v203_v56 }
 0x1fe   :  { %v206_v59 = vrot.slane %v205_v58, 2 }
 0x200   :  { %v207_v60 = vadd.f32 %v206_v59, %v205_v58 }
 0x202   :  { %v208_v61 = vrot.slane %v207_v60, 1 }
 0x204   :  { %v209_v62 = vadd.f32 %v208_v61, %v207_v60 }
 0x206   :  { %270 = vpush %v209_v62 }
 0x237   :  { %s271_s15 = spop %270 }
 0x238   :  { %s211_s16 = smul.f32 0.125, %s271_s15 }
 0x23a   :  { %v212_v63 = vstv %s211_s16 }
 0x23b   :  { %214 = vst.msk [vmem:[#allocation11] sm:$0x1] %vm213_vm3, %v212_v63 }
 0x23c   :  { %339 = shalt.err (!%p336_p0)
}
 0x23d   :  { %224 = dma.vmem_to_hbm [thread:$0]  %s222_s14, 16, %s464_s3, [#allocation8]  }
 0x23e   :  { %354 = dma.done.wait [#allocation8], 16  }
 0x23f   :  { %355 = vsyncadd [#allocation8], 4294967280 }
 0x240   :  { %228 = vsyncpa [#allocation7], 1 }
 0x241   :  { %229 = vsyncpa [#allocation10], 1 }
 0x242   :  { %230 = vsyncpa [#allocation8], 1 }

</bundles_post_ra>
